<compile_context>
chip_gen: v7x
topology: tpu7x:2x2x1
jax: 0.10.0
libtpu: 0.0.40
codegen_flags: <defaults>
</compile_context>

<pallas_src>
import functools

import jax
import jax.numpy as jnp
from jax.experimental import pallas as pl
from jax.experimental.pallas import tpu as pltpu

BN_EPS = 1e-5

_LANE = 128
_MAX_TILE_PX = 256 * 1024             # 256K pixels -> 3 MiB per (3, T) f32 x block
_VMEM_LIMIT_BYTES = 48 * 1024 * 1024  # < 64 MiB physical on v7x, plenty on v5e/v6e
_FUSED_VMEM_BUDGET = 24 * 1024 * 1024 # resident-x path only when well under limit
_FUSED_MAX_BATCH = 64                 # fused kernel unrolls a static batch loop


# ---------------------------------------------------------------------------
# BN fold: conv1 is linear, so BN(h) stats follow from x's first/second moments.
# ---------------------------------------------------------------------------
def _fold_bn_into_conv1(sx, sxx, inv_count, w1, b1, gamma, beta):
    """Fold training-mode BatchNorm2d into the preceding 1x1 conv.

    sx: (3,1) = sum_p x, sxx: (3,3) = sum_p x x^T, inv_count = 1/(N*H*W).
    Returns folded (w1', b1') so that  w1' @ x + b1'  ==  BN(w1 @ x + b1).
    """
    mean_x = sx * inv_count                                          # (3, 1)
    exx = sxx * inv_count                                            # (3, 3)
    wm = jnp.dot(w1, mean_x, preferred_element_type=jnp.float32)     # (16, 1) = W1 E[x]
    mean_h = wm + b1                                                 # (16, 1)
    # E[h_i^2] = w_i^T E[xx^T] w_i + 2 b_i (w_i . E[x]) + b_i^2
    q = jnp.sum(jnp.dot(w1, exx, preferred_element_type=jnp.float32) * w1,
                axis=1, keepdims=True)                               # (16, 1)
    eh2 = q + 2.0 * b1 * wm + b1 * b1
    # NOTE: E[h^2] - E[h]^2 can cancel in f32 for extremely large pixel counts;
    # switch to shifted/compensated moments if that regime matters.
    var = jnp.maximum(eh2 - mean_h * mean_h, 0.0)                    # biased variance
    scale = gamma * jax.lax.rsqrt(var + BN_EPS)                      # (16, 1)
    w1p = w1 * scale                                                 # (16, 3)
    b1p = (b1 - mean_h) * scale + beta                               # (16, 1)
    return w1p, b1p


# ---------------------------------------------------------------------------
# Fused single-pass kernel: x resident in VMEM, read from HBM exactly once.
# ---------------------------------------------------------------------------
def _fused_guide_kernel(x_ref, w1_ref, b1_ref, gamma_ref, beta_ref,
                        w2_ref, b2_ref, o_ref, *, inv_count):
    n = x_ref.shape[0]

    # Pass A: global x moments (3-channel reductions + tiny (3,3) Gram).
    sx = jnp.zeros((3, 1), jnp.float32)
    sxx = jnp.zeros((3, 3), jnp.float32)
    for ni in range(n):                       # small static unroll over batch
        xb = x_ref[ni]                        # (3, HW)
        sx = sx + jnp.sum(xb, axis=1, keepdims=True)
        sxx = sxx + jnp.einsum("cp,dp->cd", xb, xb,
                               preferred_element_type=jnp.float32)

    # Fold BN into conv1 (16-element math, stays in-kernel).
    w1p, b1p = _fold_bn_into_conv1(sx, sxx, inv_count, w1_ref[...], b1_ref[...],
                                   gamma_ref[...], beta_ref[...])
    w2 = w2_ref[...]
    b2 = b2_ref[...]

    # Pass B: folded conv1 -> ReLU -> conv2 -> sigmoid (x re-read from VMEM only).
    for ni in range(n):
        xb = x_ref[ni]                                                 # (3, HW)
        hid = jnp.dot(w1p, xb, preferred_element_type=jnp.float32) + b1p
        hid = jnp.maximum(hid, 0.0)
        y = jnp.dot(w2, hid, preferred_element_type=jnp.float32) + b2
        o_ref[ni] = jax.nn.sigmoid(y)                                  # (1, HW) lane-dense


# ---------------------------------------------------------------------------
# Fallback pass 1: tiled x-moment reduction (per-batch partial accumulators).
# ---------------------------------------------------------------------------
def _moments_kernel(x_ref, sx_ref, sxx_ref, *, hw, tile):
    ti = pl.program_id(1)

    @pl.when(ti == 0)
    def _init():
        sx_ref[...] = jnp.zeros_like(sx_ref)
        sxx_ref[...] = jnp.zeros_like(sxx_ref)

    x = x_ref[...]                                                     # (3, tile)
    if hw % tile:  # mask the ragged last tile (cdiv grid stays lane-dense)
        lane = jax.lax.broadcasted_iota(jnp.int32, x.shape, 1)
        x = jnp.where(ti * tile + lane < hw, x, 0.0)
    sx_ref[...] += jnp.sum(x, axis=1, keepdims=True)
    sxx_ref[...] += jnp.einsum("cp,dp->cd", x, x,
                               preferred_element_type=jnp.float32)


# ---------------------------------------------------------------------------
# Fallback pass 2: folded conv1 -> ReLU -> conv2 -> sigmoid, fully parallel.
# ---------------------------------------------------------------------------
def _apply_kernel(x_ref, w1_ref, b1_ref, w2_ref, b2_ref, o_ref):
    x = x_ref[...]                                                     # (3, tile)
    hid = jnp.dot(w1_ref[...], x, preferred_element_type=jnp.float32) + b1_ref[...]
    hid = jnp.maximum(hid, 0.0)
    y = jnp.dot(w2_ref[...], hid, preferred_element_type=jnp.float32) + b2_ref[...]
    o_ref[...] = jax.nn.sigmoid(y)                                     # (1, tile) lane-dense


def _pixel_tile(hw):
    """Large lane-aligned pixel tile (multiple of 128, capped at ~3 MiB x block)."""
    t = min(hw, _MAX_TILE_PX)
    return ((t + _LANE - 1) // _LANE) * _LANE


def guide_nn_forward(x_nchw, params, *, force_two_pass=False):
    """x_nchw: (N, 3, H, W) float32. Returns (N, 1, H, W) float32."""
    n, c, hh, ww = x_nchw.shape
    assert c == 3
    hw = hh * ww
    # Free reshape: NCHW already has channels on sublanes, pixels lane-dense.
    x = x_nchw.reshape(n, c, hw)

    w1, b1 = params["w1"], params["b1"]            # (16, 3), (16, 1)
    gamma, beta = params["gamma"], params["beta"]  # (16, 1), (16, 1)
    w2, b2 = params["w2"], params["b2"]            # (1, 16), (1, 1)
    inv_count = 1.0 / float(n * hw)

    # --- path 1: fused single pass, x VMEM-resident (one HBM read of x) -----
    fused_bytes = 4 * (3 * n * hw + n * hw + 2 * 16 * hw) + (1 << 16)
    if (not force_two_pass and fused_bytes <= _FUSED_VMEM_BUDGET
            and n <= _FUSED_MAX_BATCH):
        out = pl.pallas_call(
            functools.partial(_fused_guide_kernel, inv_count=inv_count),
            out_shape=jax.ShapeDtypeStruct((n, 1, hw), jnp.float32),
            compiler_params=pltpu.CompilerParams(
                vmem_limit_bytes=_VMEM_LIMIT_BYTES),
        )(x, w1, b1, gamma, beta, w2, b2)
        return out.reshape(n, 1, hh, ww)

    # --- path 2: two streamed passes over large lane-dense pixel tiles ------
    tile = _pixel_tile(hw)
    grid = (n, pl.cdiv(hw, tile))
    x_spec = pl.BlockSpec((None, c, tile), lambda ni, ti: (ni, 0, ti))

    def _const(shape):
        return pl.BlockSpec(shape, lambda ni, ti: (0,) * len(shape))

    # pass 1: per-batch x moments (batch axis "parallel" -> megacore on v7x).
    sx, sxx = pl.pallas_call(
        functools.partial(_moments_kernel, hw=hw, tile=tile),
        out_shape=(jax.ShapeDtypeStruct((n, 3, 1), jnp.float32),
                   jax.ShapeDtypeStruct((n, 3, 3), jnp.float32)),
        grid=grid,
        in_specs=[x_spec],
        out_specs=(pl.BlockSpec((None, 3, 1), lambda ni, ti: (ni, 0, 0)),
                   pl.BlockSpec((None, 3, 3), lambda ni, ti: (ni, 0, 0))),
        compiler_params=pltpu.CompilerParams(
            dimension_semantics=("parallel", "arbitrary"),
            vmem_limit_bytes=_VMEM_LIMIT_BYTES),
    )(x)

    # fold BN into conv1 (tiny math, plain JAX) using batch-reduced moments.
    w1p, b1p = _fold_bn_into_conv1(jnp.sum(sx, axis=0), jnp.sum(sxx, axis=0),
                                   inv_count, w1, b1, gamma, beta)

    # pass 2: fused apply, both grid axes parallel.
    out = pl.pallas_call(
        _apply_kernel,
        out_shape=jax.ShapeDtypeStruct((n, 1, hw), jnp.float32),
        grid=grid,
        in_specs=[x_spec, _const((16, 3)), _const((16, 1)),
                  _const((1, 16)), _const((1, 1))],
        out_specs=pl.BlockSpec((None, 1, tile), lambda ni, ti: (ni, 0, ti)),
        compiler_params=pltpu.CompilerParams(
            dimension_semantics=("parallel", "parallel"),
            vmem_limit_bytes=_VMEM_LIMIT_BYTES),
    )(x, w1p, b1p, w2, b2)

    return out.reshape(n, 1, hh, ww)


def init_params(key):
    """Deterministic synthetic parameters matching the PyTorch module shapes.

    Conv2d(3,16,1).weight (16,3,1,1) -> stored squeezed as (16,3).
    Conv2d(16,1,1).weight (1,16,1,1) -> stored lane-dense as (1,16).
    Biases / BN affine params are (16,1) columns.
    """
    k1, k2, k3, k4, k5, k6 = jax.random.split(key, 6)
    return {
        "w1": jax.random.normal(k1, (16, 3), jnp.float32) * 0.5,
        "b1": jax.random.normal(k2, (16, 1), jnp.float32) * 0.1,
        "gamma": 1.0 + 0.1 * jax.random.normal(k3, (16, 1), jnp.float32),
        "beta": 0.1 * jax.random.normal(k4, (16, 1), jnp.float32),
        "w2": jax.random.normal(k5, (1, 16), jnp.float32) * 0.5,
        "b2": jax.random.normal(k6, (1, 1), jnp.float32) * 0.1,
    }


def _reference_forward(x_nchw, params):
    """Pure-JAX reference (explicit BN over h) for validation."""
    n, c, hh, ww = x_nchw.shape
    x = x_nchw.reshape(n, c, hh * ww)
    hid = jnp.einsum("oc,ncp->nop", params["w1"], x) + params["b1"][None]
    mean = jnp.mean(hid, axis=(0, 2), keepdims=True)
    var = jnp.mean((hid - mean) ** 2, axis=(0, 2), keepdims=True)
    hid = (hid - mean) * jax.lax.rsqrt(var + BN_EPS)
    hid = hid * params["gamma"][None] + params["beta"][None]
    hid = jnp.maximum(hid, 0.0)
    y = jnp.einsum("oc,ncp->nop", params["w2"], hid) + params["b2"][None]
    return jax.nn.sigmoid(y).reshape(n, 1, hh, ww)


if __name__ == "__main__":
    key = jax.random.PRNGKey(0)
    kx, kp = jax.random.split(key)

    # Small, module-consistent shapes: batch=2, 3 input channels, 16x16 spatial.
    x = jax.random.normal(kx, (2, 3, 16, 16), jnp.float32)
    params = init_params(kp)

    # Main path: fused single-read kernel (x fits VMEM at these sizes).
    out_fused = jax.block_until_ready(guide_nn_forward(x, params))
    # Fallback path: streamed two-pass kernels (exercised for coverage).
    out_tiled = jax.block_until_ready(
        guide_nn_forward(x, params, force_two_pass=True))

    ref = _reference_forward(x, params)
    assert out_fused.shape == (2, 1, 16, 16)
    assert jnp.allclose(out_fused, ref, atol=5e-5, rtol=1e-4), float(
        jnp.max(jnp.abs(out_fused - ref)))
    assert jnp.allclose(out_tiled, ref, atol=5e-5, rtol=1e-4), float(
        jnp.max(jnp.abs(out_tiled - ref)))

    print("KERNEL_OK")
</pallas_src>

<mosaic_0001>
module attributes {stable_mosaic.version = 11 : i64} {
  func.func @_fused_guide_kernel(%arg0: memref<2x3x256xf32, #tpu.memory_space<vmem>>, %arg1: memref<16x3xf32, #tpu.memory_space<vmem>>, %arg2: memref<16x1xf32, #tpu.memory_space<vmem>>, %arg3: memref<16x1xf32, #tpu.memory_space<vmem>>, %arg4: memref<16x1xf32, #tpu.memory_space<vmem>>, %arg5: memref<1x16xf32, #tpu.memory_space<vmem>>, %arg6: memref<1x1xf32, #tpu.memory_space<vmem>>, %arg7: memref<2x1x256xf32, #tpu.memory_space<vmem>>) attributes {dimension_semantics = [], scalar_prefetch = 0 : i64, scratch_operands = 0 : i64, tpu.core_type = #tpu.core_type<tc>} {
    %cst = arith.constant 0.000000e+00 : f32
    %0 = vector.broadcast %cst : f32 to vector<3x1xf32>
    %cst_0 = arith.constant 0.000000e+00 : f32
    %1 = vector.broadcast %cst_0 : f32 to vector<3x3xf32>
    %c0 = arith.constant 0 : index
    %c0_1 = arith.constant 0 : index
    %c0_2 = arith.constant 0 : index
    %2 = vector.load %arg0[%c0, %c0_1, %c0_2] : memref<2x3x256xf32, #tpu.memory_space<vmem>>, vector<1x3x256xf32>
    %3 = vector.shape_cast %2 : vector<1x3x256xf32> to vector<3x256xf32>
    %cst_3 = arith.constant dense<0.000000e+00> : vector<3xf32>
    %4 = vector.multi_reduction <add>, %3, %cst_3 [1] : vector<3x256xf32> to vector<3xf32>
    %5 = vector.shape_cast %4 : vector<3xf32> to vector<3x1xf32>
    %6 = arith.addf %0, %5 : vector<3x1xf32>
    "tpu.trace_start"() <{level = 10 : i32, message = "cp,dp->cd"}> : () -> ()
    %cst_4 = arith.constant dense<0.000000e+00> : vector<3x3xf32>
    %7 = tpu.matmul %3, %3, %cst_4 {dimension_numbers = #tpu.dot_dimension_numbers<[1], [1], [0], [0], [0, 0, 1, 0], [], []>} : vector<3x256xf32>, vector<3x256xf32>, vector<3x3xf32> -> vector<3x3xf32>
    "tpu.trace_stop"() : () -> ()
    %8 = arith.addf %1, %7 : vector<3x3xf32>
    %c1 = arith.constant 1 : index
    %c0_5 = arith.constant 0 : index
    %c0_6 = arith.constant 0 : index
    %9 = vector.load %arg0[%c1, %c0_5, %c0_6] : memref<2x3x256xf32, #tpu.memory_space<vmem>>, vector<1x3x256xf32>
    %10 = vector.shape_cast %9 : vector<1x3x256xf32> to vector<3x256xf32>
    %cst_7 = arith.constant dense<0.000000e+00> : vector<3xf32>
    %11 = vector.multi_reduction <add>, %10, %cst_7 [1] : vector<3x256xf32> to vector<3xf32>
    %12 = vector.shape_cast %11 : vector<3xf32> to vector<3x1xf32>
    %13 = arith.addf %6, %12 : vector<3x1xf32>
    "tpu.trace_start"() <{level = 10 : i32, message = "cp,dp->cd"}> : () -> ()
    %cst_8 = arith.constant dense<0.000000e+00> : vector<3x3xf32>
    %14 = tpu.matmul %10, %10, %cst_8 {dimension_numbers = #tpu.dot_dimension_numbers<[1], [1], [0], [0], [0, 0, 1, 0], [], []>} : vector<3x256xf32>, vector<3x256xf32>, vector<3x3xf32> -> vector<3x3xf32>
    "tpu.trace_stop"() : () -> ()
    %15 = arith.addf %8, %14 : vector<3x3xf32>
    %c0_9 = arith.constant 0 : index
    %c0_10 = arith.constant 0 : index
    %16 = vector.load %arg1[%c0_9, %c0_10] : memref<16x3xf32, #tpu.memory_space<vmem>>, vector<16x3xf32>
    %c0_11 = arith.constant 0 : index
    %c0_12 = arith.constant 0 : index
    %17 = vector.load %arg2[%c0_11, %c0_12] : memref<16x1xf32, #tpu.memory_space<vmem>>, vector<16x1xf32>
    %c0_13 = arith.constant 0 : index
    %c0_14 = arith.constant 0 : index
    %18 = vector.load %arg3[%c0_13, %c0_14] : memref<16x1xf32, #tpu.memory_space<vmem>>, vector<16x1xf32>
    %c0_15 = arith.constant 0 : index
    %c0_16 = arith.constant 0 : index
    %19 = vector.load %arg4[%c0_15, %c0_16] : memref<16x1xf32, #tpu.memory_space<vmem>>, vector<16x1xf32>
    %cst_17 = arith.constant 0.001953125 : f32
    %20 = vector.broadcast %cst_17 : f32 to vector<3x1xf32>
    %21 = arith.mulf %13, %20 : vector<3x1xf32>
    %cst_18 = arith.constant 0.001953125 : f32
    %22 = vector.broadcast %cst_18 : f32 to vector<3x3xf32>
    %23 = arith.mulf %15, %22 : vector<3x3xf32>
    %cst_19 = arith.constant dense<0.000000e+00> : vector<16x1xf32>
    %24 = tpu.matmul %16, %21, %cst_19 {dimension_numbers = #tpu.dot_dimension_numbers<[1], [0], [0], [1], [0, 0, 1, 1], [], []>} : vector<16x3xf32>, vector<3x1xf32>, vector<16x1xf32> -> vector<16x1xf32>
    %25 = arith.addf %24, %17 : vector<16x1xf32>
    %cst_20 = arith.constant dense<0.000000e+00> : vector<16x3xf32>
    %26 = tpu.matmul %16, %23, %cst_20 {dimension_numbers = #tpu.dot_dimension_numbers<[1], [0], [0], [1], [0, 0, 1, 1], [], []>} : vector<16x3xf32>, vector<3x3xf32>, vector<16x3xf32> -> vector<16x3xf32>
    %27 = arith.mulf %26, %16 : vector<16x3xf32>
    %cst_21 = arith.constant dense<0.000000e+00> : vector<16xf32>
    %28 = vector.multi_reduction <add>, %27, %cst_21 [1] : vector<16x3xf32> to vector<16xf32>
    %29 = vector.shape_cast %28 : vector<16xf32> to vector<16x1xf32>
    %cst_22 = arith.constant 2.000000e+00 : f32
    %30 = vector.broadcast %cst_22 : f32 to vector<16x1xf32>
    %31 = arith.mulf %30, %17 : vector<16x1xf32>
    %32 = arith.mulf %31, %24 : vector<16x1xf32>
    %33 = arith.addf %29, %32 : vector<16x1xf32>
    %34 = arith.mulf %17, %17 : vector<16x1xf32>
    %35 = arith.addf %33, %34 : vector<16x1xf32>
    %36 = arith.mulf %25, %25 : vector<16x1xf32>
    %37 = arith.subf %35, %36 : vector<16x1xf32>
    %cst_23 = arith.constant 0.000000e+00 : f32
    %38 = vector.broadcast %cst_23 : f32 to vector<16x1xf32>
    %39 = arith.maximumf %37, %38 : vector<16x1xf32>
    %cst_24 = arith.constant 9.99999974E-6 : f32
    %40 = vector.broadcast %cst_24 : f32 to vector<16x1xf32>
    %41 = arith.addf %39, %40 : vector<16x1xf32>
    %42 = math.rsqrt %41 : vector<16x1xf32>
    %43 = arith.mulf %18, %42 : vector<16x1xf32>
    %44 = vector.broadcast %43 : vector<16x1xf32> to vector<16x3xf32>
    %45 = arith.mulf %16, %44 : vector<16x3xf32>
    %46 = arith.subf %17, %25 : vector<16x1xf32>
    %47 = arith.mulf %46, %43 : vector<16x1xf32>
    %48 = arith.addf %47, %19 : vector<16x1xf32>
    %c0_25 = arith.constant 0 : index
    %c0_26 = arith.constant 0 : index
    %49 = vector.load %arg5[%c0_25, %c0_26] : memref<1x16xf32, #tpu.memory_space<vmem>>, vector<1x16xf32>
    %c0_27 = arith.constant 0 : index
    %c0_28 = arith.constant 0 : index
    %50 = vector.load %arg6[%c0_27, %c0_28] : memref<1x1xf32, #tpu.memory_space<vmem>>, vector<1x1xf32>
    %c0_29 = arith.constant 0 : index
    %c0_30 = arith.constant 0 : index
    %c0_31 = arith.constant 0 : index
    %51 = vector.load %arg0[%c0_29, %c0_30, %c0_31] : memref<2x3x256xf32, #tpu.memory_space<vmem>>, vector<1x3x256xf32>
    %52 = vector.shape_cast %51 : vector<1x3x256xf32> to vector<3x256xf32>
    %cst_32 = arith.constant dense<0.000000e+00> : vector<16x256xf32>
    %53 = tpu.matmul %45, %52, %cst_32 {dimension_numbers = #tpu.dot_dimension_numbers<[1], [0], [0], [1], [0, 0, 1, 1], [], []>} : vector<16x3xf32>, vector<3x256xf32>, vector<16x256xf32> -> vector<16x256xf32>
    %54 = vector.broadcast %48 : vector<16x1xf32> to vector<16x256xf32>
    %55 = arith.addf %53, %54 : vector<16x256xf32>
    %cst_33 = arith.constant 0.000000e+00 : f32
    %56 = vector.broadcast %cst_33 : f32 to vector<16x256xf32>
    %57 = arith.maximumf %55, %56 : vector<16x256xf32>
    %cst_34 = arith.constant dense<0.000000e+00> : vector<1x256xf32>
    %58 = tpu.matmul %49, %57, %cst_34 {dimension_numbers = #tpu.dot_dimension_numbers<[1], [0], [0], [1], [0, 0, 1, 1], [], []>} : vector<1x16xf32>, vector<16x256xf32>, vector<1x256xf32> -> vector<1x256xf32>
    %59 = vector.broadcast %50 : vector<1x1xf32> to vector<1x256xf32>
    %60 = arith.addf %58, %59 : vector<1x256xf32>
    %61 = arith.negf %60 : vector<1x256xf32>
    %62 = math.exp %61 : vector<1x256xf32>
    %cst_35 = arith.constant 1.000000e+00 : f32
    %63 = vector.broadcast %cst_35 : f32 to vector<1x256xf32>
    %64 = arith.addf %63, %62 : vector<1x256xf32>
    %65 = arith.divf %63, %64 : vector<1x256xf32>
    %c0_36 = arith.constant 0 : index
    %c0_37 = arith.constant 0 : index
    %c0_38 = arith.constant 0 : index
    %66 = vector.load %arg7[%c0_36, %c0_37, %c0_38] : memref<2x1x256xf32, #tpu.memory_space<vmem>>, vector<1x1x256xf32>
    %67 = vector.shape_cast %66 : vector<1x1x256xf32> to vector<1x256xf32>
    %68 = vector.shape_cast %65 : vector<1x256xf32> to vector<1x1x256xf32>
    tpu.vector_store %arg7[%c0_36, %c0_37, %c0_38], %68 {strides = array<i32>} : memref<2x1x256xf32, #tpu.memory_space<vmem>>, vector<1x1x256xf32>,
    %c1_39 = arith.constant 1 : index
    %c0_40 = arith.constant 0 : index
    %c0_41 = arith.constant 0 : index
    %69 = vector.load %arg0[%c1_39, %c0_40, %c0_41] : memref<2x3x256xf32, #tpu.memory_space<vmem>>, vector<1x3x256xf32>
    %70 = vector.shape_cast %69 : vector<1x3x256xf32> to vector<3x256xf32>
    %cst_42 = arith.constant dense<0.000000e+00> : vector<16x256xf32>
    %71 = tpu.matmul %45, %70, %cst_42 {dimension_numbers = #tpu.dot_dimension_numbers<[1], [0], [0], [1], [0, 0, 1, 1], [], []>} : vector<16x3xf32>, vector<3x256xf32>, vector<16x256xf32> -> vector<16x256xf32>
    %72 = vector.broadcast %48 : vector<16x1xf32> to vector<16x256xf32>
    %73 = arith.addf %71, %72 : vector<16x256xf32>
    %cst_43 = arith.constant 0.000000e+00 : f32
    %74 = vector.broadcast %cst_43 : f32 to vector<16x256xf32>
    %75 = arith.maximumf %73, %74 : vector<16x256xf32>
    %cst_44 = arith.constant dense<0.000000e+00> : vector<1x256xf32>
    %76 = tpu.matmul %49, %75, %cst_44 {dimension_numbers = #tpu.dot_dimension_numbers<[1], [0], [0], [1], [0, 0, 1, 1], [], []>} : vector<1x16xf32>, vector<16x256xf32>, vector<1x256xf32> -> vector<1x256xf32>
    %77 = vector.broadcast %50 : vector<1x1xf32> to vector<1x256xf32>
    %78 = arith.addf %76, %77 : vector<1x256xf32>
    %79 = arith.negf %78 : vector<1x256xf32>
    %80 = math.exp %79 : vector<1x256xf32>
    %cst_45 = arith.constant 1.000000e+00 : f32
    %81 = vector.broadcast %cst_45 : f32 to vector<1x256xf32>
    %82 = arith.addf %81, %80 : vector<1x256xf32>
    %83 = arith.divf %81, %82 : vector<1x256xf32>
    %c1_46 = arith.constant 1 : index
    %c0_47 = arith.constant 0 : index
    %c0_48 = arith.constant 0 : index
    %84 = vector.load %arg7[%c1_46, %c0_47, %c0_48] : memref<2x1x256xf32, #tpu.memory_space<vmem>>, vector<1x1x256xf32>
    %85 = vector.shape_cast %84 : vector<1x1x256xf32> to vector<1x256xf32>
    %86 = vector.shape_cast %83 : vector<1x256xf32> to vector<1x1x256xf32>
    tpu.vector_store %arg7[%c1_46, %c0_47, %c0_48], %86 {strides = array<i32>} : memref<2x1x256xf32, #tpu.memory_space<vmem>>, vector<1x1x256xf32>,
    return
  }
}

</mosaic_0001>

<bundles_post_ra>
// kernel: tpu_custom_call.1
= control target key start
LH: loop header
LB: loop body
LE: loop exit
PB: predicated region body
PF: predicated region fallthrough
CT: control target
= control target key end

     0   :  { %s1094_s0 = inlined_call_operand.vmem [shape: f32[2,3,256], index: 0, kind: input, shape index: {}]   ;;  %s1095_s1 = inlined_call_operand.vmem [shape: f32[16,3], index: 1, kind: input, shape index: {}]   ;;  %s1096_s2 = inlined_call_operand.vmem [shape: f32[16,1], index: 2, kind: input, shape index: {}]   ;;  %s1097_s3 = inlined_call_operand.vmem [shape: f32[16,1], index: 3, kind: input, shape index: {}]   ;;  %s1098_s4 = inlined_call_operand.vmem [shape: f32[16,1], index: 4, kind: input, shape index: {}]   ;;  %s1099_s5 = inlined_call_operand.vmem [shape: f32[1,16], index: 5, kind: input, shape index: {}]   ;;  %s1100_s6 = inlined_call_operand.<no memory space> [shape: f32[1,1], index: 6, kind: input, shape index: {}]   ;;  %s1101_s7 = inlined_call_operand.hbm [shape: f32[2,1,256], index: 7, kind: output, shape index: {}]  }
   0x1   :  { %v12_v0 = vstv %s1100_s6 }
   0x2   :  { %13 = vst [vmem:[#allocation2] sm:$0x1] %v12_v0 }
   0x3   :  { %v846_v1 = vld [vmem:[%s1094_s0 + $0x8] sm:$0x77]  ;;  %v29_v2 = vld [vmem:[%s1094_s0] sm:$0x77]  ;;  %vm33_vm0 = vcmask 1042432  }
   0x4   :  { %v43_v3 = vcombine.high %v846_v1, %v846_v1  ;;  %v31_v4 = vcombine.high %v29_v2, %v29_v2  ;;  %v34_v5 = vsel %vm33_vm0, %v29_v2, 0.0 }
   0x5   :  { %14 = vsyncpa [#allocation4], 0  ;;  %v45_v7 = vsel %vm33_vm0, %v846_v1, 0.0  ;;  %v1012_v11 = vld [vmem:[%s1095_s1] sm:$0xff]  ;;  %vm201_vm1 = vcmask 23552   ;;  %v1019_v16 = vld [vmem:[%s1095_s1 + $0x8] sm:$0xff] }
   0x6   :  { %51 = vmatprep.subr.mxu0 %v43_v3  ;;  %115 = vmatprep.mubr.f32.mxu0 %v43_v3  ;;  %v35_v6 = vsel %vm33_vm0, %v31_v4, 0.0  ;;  %v46_v8 = vsel %vm33_vm0, %v43_v3, 0.0  ;;  %v950_v28 = vmov 0   ;;  %v193_v29 = vld [vmem:[%s1096_s2] sm:$0xff]  ;;  %v194_v31 = vld [vmem:[%s1096_s2 + $0x8] sm:$0xff]  ;;  %v951_v61 = vmov 0.0  }
   0x7   :  { %52 = vmatpush1.xpose.msra.mxu0 %v846_v1  ;;  %v36_v9 = vadd.f32 %v35_v6, %v34_v5  ;;  %v47_v10 = vadd.f32 %v46_v8, %v45_v7  ;;  %876 = vmatprep.mubr.msk.f32.mxu1 %vm201_vm1, %v1012_v11  ;;  %v374_v30 = vmul.f32 2.0, %v193_v29  ;;  %v375_v32 = vmul.f32 2.0, %v194_v31  ;;  %v195_v53 = vld [vmem:[%s1097_s3] sm:$0xff]  ;;  %v196_v58 = vld [vmem:[%s1097_s3 + $0x8] sm:$0xff] }
   0x8   :  { %121 = vmatprep.subr.mxu0 %v31_v4  ;;  %900 = vset.pattern.permute.xlu0 %v950_v28  ;;  %v380_v35 = vmul.f32 %v193_v29, %v193_v29  ;;  %v381_v42 = vmul.f32 %v194_v31, %v194_v31  ;;  %v416_v55 = vld [vmem:[%s1094_s0] sm:$0x77]  ;;  %vm529_vm2 = vcmask 130048  }
   0x9   :  { %37 = vadd.xlane.f32.xlu0 %v36_v9  ;;  %901 = vset.pattern.permute.xlu1 %v950_v28  ;;  %v428_v57 = vcombine.high %v416_v55, %v416_v55  ;;  %v197_v0 = vld [vmem:[%s1098_s4] sm:$0xff] }
   0xa   :  { %116 = vmatmul.mubr.f32.vlgmr.msra.gmra.mrb[0].mxu0 %v846_v1  ;;  %v415_v6 = vld [vmem:[#allocation2] sm:$0x1] }
   0xb   :  { %122 = vmatpush1.xpose.msra.mxu0 %v29_v2  ;;  %185 = vmatprep.mubr.f32.mxu0 %v31_v4  ;;  %v198_v4 = vld [vmem:[%s1098_s4 + $0x8] sm:$0xff] }
   0xd   :  { %48 = vadd.xlane.f32.xlu0 %v47_v10 }
  0x12   :  { %186 = vmatmul.mubr.f32.vlgmr.msra.gmra.mrb[0].mxu0 %v29_v2 }
  0x13   :  { %597 = vmatprep.mubr.f32.mxu0 %v951_v61 }
  0x96   :  { %v38_v12 = vpop.xlane.xlu0 %37 }
  0x9a   :  { %v49_v13 = vpop.xlane.xlu0 %48 }
  0x9b   :  { %v50_v14 = vadd.f32 %v49_v13, %v38_v12 }
  0x9d   :  { %v199_v15 = vmul.f32 0.001953125, %v50_v14 }
  0x9f   :  { %874 = vmatprep.subr.msk.mxu1 %vm33_vm0, %v199_v15 }
  0xa0   :  { %875 = vmatpush3.msk.msra.mxu1 %vm33_vm0, %v199_v15 }
  0xa1   :  { %877 = vmatmul.mubr.msk.f32.vlgmr.msra.gmra.mrb[0].mxu1 %vm201_vm1, %v1019_v16 }
  0xa2   :  { %881 = vmatprep.mubr.msk.f32.mxu1 %vm201_vm1, %v1012_v11 }
  0xe5   :  { %v187_v17 = vpop.f32.mrb[0].mxu0 }
  0xe6   :  { %v200_v18 = vmul.f32 0.001953125, %v187_v17  ;;  %v189_v19 = vpop.f32.mrb[1].mxu0 }
  0xe8   :  { %879 = vmatprep.subr.msk.mxu1 %vm33_vm0, %v200_v18 }
  0xe9   :  { %880 = vmatpush3.msk.msra.mxu1 %vm33_vm0, %v200_v18 }
  0xea   :  { %882 = vmatmul.mubr.msk.f32.vlgmr.msra.gmra.mrb[2].mxu1 %vm201_vm1, %v1019_v16  ;;  %853 = vmatprep.subr.msk.mxu1 %vm33_vm0, %v428_v57 }
  0xeb   :  { %854 = vmatpush1.msk.msra.mxu1 %vm33_vm0, %v416_v55  ;;  %503 = vmatprep.mubr.f32.mxu1 %v951_v61 }
 0x174   :  { %v878_v20 = vpop.f32.mrb[0].mxu1 }
 0x175   :  { %v277_v21 = vpop.f32.mrb[1].mxu1  ;;  %v287_v38 = vadd.f32 %v878_v20, %v194_v31  ;;  %v377_v39 = vmul.f32 %v878_v20, %v375_v32 }
 0x176   :  { %v286_v33 = vadd.f32 %v277_v21, %v193_v29  ;;  %v376_v34 = vmul.f32 %v374_v30, %v277_v21  ;;  %v525_v30 = vlaneseq }
 0x177   :  { %v385_v46 = vmul.f32 %v287_v38, %v287_v38  ;;  %v409_v1 = vsub.f32 %v194_v31, %v287_v38 }
 0x178   :  { %v384_v40 = vmul.f32 %v286_v33, %v286_v33  ;;  %v408_v59 = vsub.f32 %v193_v29, %v286_v33  ;;  %v414_v29 = vld [vmem:[%s1099_s5] sm:$0x1]  ;;  %v526_v31 = vshrl.u32 %v525_v30, 7  ;;  %vm1074_vm3 = vcmp.lt.s32.totalorder %v525_v30, 256 }
 0x17a   :  { %v527_v32 = vsub.s32 0, %v526_v31 }
 0x1bd   :  { %v883_v22 = vpop.f32.mrb[2].mxu1 }
 0x1be   :  { %v357_v23 = vpop.f32.mrb[3].mxu1  ;;  %v367_v25 = vmul.f32 %v883_v22, %v1019_v16 }
 0x1bf   :  { %v366_v24 = vmul.f32 %v357_v23, %v1012_v11 }
 0x1c0   :  { %v371_v27 = vsel %vm201_vm1, %v367_v25, 0.0 }
 0x1c1   :  { %v368_v26 = vsel %vm201_vm1, %v366_v24, 0.0  ;;  %v860_v24 = vld [vmem:[%s1094_s0 + $0x8] sm:$0x77]  ;;  %s953_s0 = smov [#allocation3]  }
 0x1c2   :  { %369 = vadd.xlane.f32.xlu1 %v368_v26  ;;  %v641_v28 = vcombine.high %v860_v24, %v860_v24  ;;  %s835_s5 = sshll.u32 %s953_s0, 4  ;;  %s836_s5 = int_to_ptr.vmem [resolvable:$true] %s835_s5 }
 0x1c3   :  { %s926_s24 = scalar_lea.vmem %s836_s5, 64  ;;  %p931_p1 = scmp.lt.s32.totalorder %s836_s5, %s836_s5 }
 0x1c4   :  { %p927_p0 = scmp.ne.s32.totalorder %s836_s5, %s926_s24  ;;  %p932_p2 = scmp.lt.s32.totalorder %s926_s24, %s926_s24 }
 0x1c6   :  { %372 = vadd.xlane.f32.xlu1 %v371_v27  ;;  %p933_p3 = por %p932_p2, %p931_p1 }
 0x1c8   :  { %p934_p4 = pnand %p933_p3, %p927_p0 }
 0x24f   :  { %v370_v36 = vpop.xlane.xlu1 %369 }
 0x250   :  { %v378_v37 = vadd.f32 %v376_v34, %v370_v36 }
 0x252   :  { %v382_v41 = vadd.f32 %v380_v35, %v378_v37 }
 0x253   :  { %v373_v43 = vpop.xlane.xlu1 %372 }
 0x254   :  { %v386_v44 = vsub.f32 %v382_v41, %v384_v40  ;;  %v379_v45 = vadd.f32 %v377_v39, %v373_v43 }
 0x256   :  { %v388_v47 = vmax.f32 %v386_v44, 0.0  ;;  %v383_v48 = vadd.f32 %v381_v42, %v379_v45 }
 0x258   :  { %v390_v49 = vadd.f32 1e-05, %v388_v47  ;;  %v387_v50 = vsub.f32 %v383_v48, %v385_v46 }
 0x25a   :  { %906 = vrsqrt.f32 %v390_v49  ;;  %v389_v51 = vmax.f32 %v387_v50, 0.0 }
 0x25c   :  { %v391_v52 = vadd.f32 1e-05, %v389_v51 }
 0x25e   :  { %908 = vrsqrt.f32 %v391_v52 }
 0x264   :  { %v907_v54 = vpop.eup %906 }
 0x265   :  { %v394_v56 = vmul.f32 %v907_v54, %v195_v53 }
 0x267   :  { %398 = vperm.xlu0 %900, %v394_v56   ;;  %v410_v63 = vmul.f32 %v408_v59, %v394_v56  ;;  %v952_v59 = vmov 1966171168  }
 0x268   :  { %v909_v60 = vpop.eup %908 }
 0x269   :  { %v395_v62 = vmul.f32 %v909_v60, %v196_v58  ;;  %v412_v2 = vadd.f32 %v410_v63, %v197_v0  ;;  %v620_v60 = vunpack.c.l.s4 %v952_v59 }
 0x26b   :  { %403 = vperm.xlu1 %901, %v395_v62   ;;  %v411_v3 = vmul.f32 %v409_v1, %v395_v62 }
 0x26d   :  { %v413_v5 = vadd.f32 %v411_v3, %v198_v4 }
 0x26f   :  { %419 = vperm.xlu1 %901, %v412_v2  }
 0x273   :  { %424 = vperm.xlu1 %901, %v413_v5  }
 0x277   :  { %522 = vperm.xlu1 %901, %v415_v6  }
 0x2e6   :  { %v399_v7 = vpop.permute.xlu0 %398 }
 0x2e7   :  { %v406_v8 = vmul.f32 %v399_v7, %v1012_v11 }
 0x2e9   :  { %855 = vmatmul.mubr.msk.f32.vlgmr.msra.gmra.mrb[4].mxu1 %vm201_vm1, %v406_v8 }
 0x2ea   :  { %v404_v9 = vpop.permute.xlu1 %403  ;;  %509 = vmatprep.mubr.f32.mxu1 %v951_v61 }
 0x2eb   :  { %v407_v10 = vmul.f32 %v404_v9, %v1019_v16 }
 0x2ed   :  { %856 = vmatmul.mubr.msk.f32.gmra.mrb[6].mxu1 %vm201_vm1, %v407_v10 }
 0x2ee   :  { %791 = vmatprep.mubr.f32.mxu1 %v951_v61  ;;  %v420_v12 = vpop.permute.xlu1 %419 }
 0x2f2   :  { %v425_v17 = vpop.permute.xlu1 %424 }
 0x2f6   :  { %v523_v33 = vpop.permute.xlu1 %522 }
 0x2f7   :  { %v528_v34 = vrot.slane %v523_v33, %v527_v32 }
 0x3bc   :  { %v505_v13 = vpop.f32.mrb[4].mxu1 }
 0x3bd   :  { %v507_v14 = vpop.f32.mrb[5].mxu1  ;;  %v506_v15 = vadd.f32 %v505_v13, %v420_v12 }
 0x3be   :  { %v508_v18 = vadd.f32 %v507_v14, %v420_v12 }
 0x3bf   :  { %v516_v11 = vmax.f32 %v506_v15, 0.0 }
 0x3c0   :  { %v511_v19 = vpop.f32.mrb[6].mxu1  ;;  %v517_v16 = vmax.f32 %v508_v18, 0.0 }
 0x3c1   :  { %v512_v20 = vadd.f32 %v511_v19, %v425_v17  ;;  %v513_v21 = vpop.f32.mrb[7].mxu1 }
 0x3c2   :  { %v514_v22 = vadd.f32 %v513_v21, %v425_v17 }
 0x3c3   :  { %v518_v23 = vmax.f32 %v512_v20, 0.0 }
 0x3c4   :  { %v519_v25 = vmax.f32 %v514_v22, 0.0 }
 0x3c5   :  { %v886_v26 = vpack.c.bf16 %v518_v23, %v516_v11 }
 0x3c6   :  { %v884_v27 = vpack.c.bf16 %v519_v25, %v517_v16 }
 0x3c8   :  { %885 = vmatprep.subr.bf16.mxu0 %v884_v27 }
 0x3c9   :  { %887 = vmatpush1.bf16.msra.mxu0 %v886_v26 }
 0x3ca   :  { %861 = vmatprep.subr.msk.mxu0 %vm33_vm0, %v641_v28 }
 0x3cc   :  { %857 = vmatmul.mubr.msk.f32.vlgmr.msra.gmra.mrb[2].mxu0 %vm529_vm2, %v414_v29 }
 0x3cd   :  { %862 = vmatpush1.msk.msra.mxu0 %vm33_vm0, %v860_v24  ;;  %710 = vmatprep.mubr.f32.mxu0 %v951_v61 }
 0x3d0   :  { %863 = vmatmul.mubr.msk.f32.vlgmr.msra.gmra.mrb[4].mxu0 %vm201_vm1, %v406_v8 }
 0x3d1   :  { %716 = vmatprep.mubr.f32.mxu0 %v951_v61  ;;  %v621_v61 = vunpack.c.0.s8 %v620_v60 }
 0x3d3   :  { %v624_v63 = vsub.s32 %v621_v61, %v526_v31 }
 0x3d4   :  { %864 = vmatmul.mubr.msk.f32.gmra.mrb[6].mxu0 %vm201_vm1, %v407_v10 }
 0x49f   :  { %v599_v35 = vpop.f32.mrb[2].mxu0 }
 0x4a0   :  { %v600_v36 = vadd.f32 %v599_v35, %v528_v34  ;;  %v601_v37 = vpop.f32.mrb[3].mxu0 }
 0x4a1   :  { %v602_v38 = vadd.f32 %v601_v37, %v528_v34 }
 0x4a2   :  { %v858_v39 = vmul.f32 -1.442695, %v600_v36 }
 0x4a3   :  { %v859_v40 = vmul.f32 -1.442695, %v602_v38  ;;  %v712_v41 = vpop.f32.mrb[4].mxu0 }
 0x4a4   :  { %910 = vpow2.f32 %v858_v39  ;;  %v714_v42 = vpop.f32.mrb[5].mxu0  ;;  %v713_v43 = vadd.f32 %v712_v41, %v420_v12 }
 0x4a5   :  { %912 = vpow2.f32 %v859_v40  ;;  %v715_v44 = vadd.f32 %v714_v42, %v420_v12 }
 0x4a6   :  { %v723_v49 = vmax.f32 %v713_v43, 0.0 }
 0x4a7   :  { %v718_v45 = vpop.f32.mrb[6].mxu0  ;;  %v724_v51 = vmax.f32 %v715_v44, 0.0 }
 0x4a8   :  { %v719_v46 = vadd.f32 %v718_v45, %v425_v17  ;;  %v720_v47 = vpop.f32.mrb[7].mxu0 }
 0x4a9   :  { %v721_v48 = vadd.f32 %v720_v47, %v425_v17 }
 0x4aa   :  { %v725_v50 = vmax.f32 %v719_v46, 0.0 }
 0x4ab   :  { %v726_v52 = vmax.f32 %v721_v48, 0.0 }
 0x4ac   :  { %v890_v53 = vpack.c.bf16 %v725_v50, %v723_v49 }
 0x4ad   :  { %v888_v54 = vpack.c.bf16 %v726_v52, %v724_v51 }
 0x4ae   :  { %v911_v55 = vpop.eup %910 }
 0x4af   :  { %v913_v56 = vpop.eup %912  ;;  %v610_v57 = vadd.f32 1.0, %v911_v55  ;;  %889 = vmatprep.subr.bf16.mxu1 %v888_v54 }
 0x4b0   :  { %v611_v58 = vadd.f32 1.0, %v913_v56  ;;  %891 = vmatpush1.bf16.msra.mxu1 %v890_v53 }
 0x4b1   :  { %914 = vrcp.f32 %v610_v57 }
 0x4b2   :  { %916 = vrcp.f32 %v611_v58 }
 0x4b3   :  { %865 = vmatmul.mubr.msk.f32.vlgmr.msra.gmra.mrb[8].mxu1 %vm529_vm2, %v414_v29 }
 0x4bb   :  { %v915_v62 = vpop.eup %914 }
 0x4bc   :  { %v917_v0 = vpop.eup %916 }
 0x4bd   :  { %v618_v1 = vcombine.low %v915_v62, %v917_v0 }
 0x4bf   :  { %v625_v2 = vrot.slane %v618_v1, %v624_v63 }
 0x4c1   :  { %v632_v4 = vrot.slane %v625_v2, %v624_v63 }
 0x4c3   :  { %638 = vst.msk [vmem:[#allocation3] sm:$0x3] %vm1074_vm3, %v632_v4 }
 0x586   :  { %v793_v5 = vpop.f32.mrb[8].mxu1 }
 0x587   :  { %v794_v6 = vadd.f32 %v793_v5, %v528_v34  ;;  %v795_v7 = vpop.f32.mrb[9].mxu1 }
 0x588   :  { %v796_v8 = vadd.f32 %v795_v7, %v528_v34 }
 0x589   :  { %v866_v9 = vmul.f32 -1.442695, %v794_v6 }
 0x58a   :  { %v867_v10 = vmul.f32 -1.442695, %v796_v8 }
 0x58b   :  { %918 = vpow2.f32 %v866_v9 }
 0x58c   :  { %920 = vpow2.f32 %v867_v10 }
 0x595   :  { %v919_v12 = vpop.eup %918 }
 0x596   :  { %v921_v13 = vpop.eup %920  ;;  %v804_v14 = vadd.f32 1.0, %v919_v12 }
 0x597   :  { %v805_v15 = vadd.f32 1.0, %v921_v13 }
 0x598   :  { %922 = vrcp.f32 %v804_v14 }
 0x599   :  { %924 = vrcp.f32 %v805_v15 }
 0x5a2   :  { %v923_v17 = vpop.eup %922 }
 0x5a3   :  { %v925_v18 = vpop.eup %924 }
 0x5a4   :  { %v812_v19 = vcombine.low %v923_v17, %v925_v18 }
 0x5a6   :  { %v819_v20 = vrot.slane %v812_v19, %v624_v63 }
 0x5a8   :  { %v826_v21 = vrot.slane %v819_v20, %v624_v63 }
 0x5aa   :  { %829 = vst.msk [vmem:[#allocation3 + $0x2] sm:$0x3] %vm1074_vm3, %v826_v21 }
 0x5ab   :  { %937 = shalt.err (!%p934_p4)
}
 0x5ac   :  { %s938_s27 = scalar_lea.hbm %s1101_s7, 64 }
 0x5ad   :  { %p939_p5 = scmp.ne.s32.totalorder %s1101_s7, %s938_s27  ;;  %p942_p6 = scmp.lt.u32.totalorder %s938_s27, %s1101_s7 }
 0x5af   :  { %p944_p7 = pnand %p942_p6, %p939_p5 }
 0x5b1   :  { %947 = shalt.err (!%p944_p7)
}
 0x5b2   :  { %s954_s8 = smov 32   ;;  %s955_s9 = smov 2  }
 0x5b3   :  { %841 = dma.vmem_to_hbm [thread:$0]  %s836_s5, 64, %s1101_s7, [#allocation4], %s954_s8, %s954_s8, %s955_s9  }
 0x5b4   :  { %948 = dma.done.wait [#allocation4], 64  }
 0x5b5   :  { %949 = vsyncadd [#allocation4], 4294967232 }
 0x5b6   :  { %845 = vsyncpa [#allocation4], 1 }

</bundles_post_ra>
